<compile_context>
chip_gen: v7x
topology: tpu7x:2x2x1
jax: 0.10.0
libtpu: 0.0.40
codegen_flags: <defaults>
</compile_context>

<pallas_src>
import math
import functools

import jax
import jax.numpy as jnp
from jax.experimental import pallas as pl
from jax.experimental.pallas import tpu as pltpu

_LANE = 128      # lane-pad width (MXU/vreg lane dimension)
_SUBLANE = 8


def _round_up(n, m):
    return (n + m - 1) // m * m


# --------------------------------------------------------------------------
# Fused MLP kernel:  h0 = x ;  h_{i+1} = relu(h_i @ W_i + b_i)  for all layers
# --------------------------------------------------------------------------
def _fused_mlp_kernel(n_layers, x_ref, *refs):
    """refs = (w0, b0, w1, b1, ..., o_ref); all feature dims 128-lane padded.

    x_ref: (tm, D0p) bf16,  w_i: (D_ip, D_{i+1}p) bf16,  b_i: (1, D_{i+1}p) f32,
    o_ref: (tm, D_lastp) f32.  The layer loop is unrolled at trace time.
    """
    o_ref = refs[-1]
    h = x_ref[...]                                     # bf16 activation tile
    y = None
    for li in range(n_layers):
        w_ref = refs[2 * li]
        b_ref = refs[2 * li + 1]
        # MXU pass: bf16 x bf16 -> f32 accumulate
        y = jnp.dot(h, w_ref[...], preferred_element_type=jnp.float32)
        y = jnp.maximum(y + b_ref[...], 0.0)           # bias + ReLU in f32 (VPU)
        h = y.astype(jnp.bfloat16)                     # bf16 feed to next MXU pass
    o_ref[...] = y.astype(o_ref.dtype)


def fused_mlp(x, weights, biases):
    """x: (B, D) f32; weights[i]: (K_i, N_i) f32; biases[i]: (N_i,) f32.

    Returns (B, N_last) f32 == relu(...relu(x @ W0 + b0)... @ W_last + b_last),
    with matmul operands in bf16 and f32 accumulation.
    """
    B, D = x.shape
    n_layers = len(weights)

    # --- padded widths (lane multiples) ------------------------------------
    dims_pad = [_round_up(D, _LANE)]
    for w in weights:
        dims_pad.append(_round_up(w.shape[1], _LANE))
    n_out_pad = dims_pad[-1]

    # --- batch tiling -------------------------------------------------------
    tm = min(_round_up(B, _SUBLANE), 256)       # rows per grid step
    b_pad = _round_up(B, tm)
    grid = (b_pad // tm,)

    # --- zero-padded, dtype-cast operands -----------------------------------
    x_p = jnp.pad(
        x.astype(jnp.bfloat16),
        ((0, b_pad - B), (0, dims_pad[0] - D)),
    )

    flat_inputs = [x_p]
    in_specs = [pl.BlockSpec((tm, dims_pad[0]), lambda i: (i, 0))]
    for li, (w, b) in enumerate(zip(weights, biases)):
        kp, np_ = dims_pad[li], dims_pad[li + 1]
        w_p = jnp.pad(
            w.astype(jnp.bfloat16),
            ((0, kp - w.shape[0]), (0, np_ - w.shape[1])),
        )
        b_p = jnp.pad(b.astype(jnp.float32), (0, np_ - b.shape[0]))[None, :]
        flat_inputs += [w_p, b_p]
        # weights / biases: constant block index -> stay VMEM-resident across
        # all batch steps (block equals full array; loaded once).
        in_specs.append(pl.BlockSpec((kp, np_), lambda i: (0, 0)))
        in_specs.append(pl.BlockSpec((1, np_), lambda i: (0, 0)))

    flops = 2 * b_pad * sum(dims_pad[li] * dims_pad[li + 1] for li in range(n_layers))
    bytes_accessed = (
        x_p.size * x_p.dtype.itemsize
        + sum(a.size * a.dtype.itemsize for a in flat_inputs[1:])
        + b_pad * n_out_pad * 4
    )

    out = pl.pallas_call(
        functools.partial(_fused_mlp_kernel, n_layers),
        out_shape=jax.ShapeDtypeStruct((b_pad, n_out_pad), jnp.float32),
        grid_spec=pl.GridSpec(
            grid=grid,
            in_specs=in_specs,
            out_specs=pl.BlockSpec((tm, n_out_pad), lambda i: (i, 0)),
        ),
        compiler_params=pltpu.CompilerParams(
            dimension_semantics=("parallel",),      # batch axis: megacore-shardable
        ),
        cost_estimate=pl.CostEstimate(
            flops=flops, transcendentals=0, bytes_accessed=bytes_accessed
        ),
    )(*flat_inputs)

    return out[:B, : weights[-1].shape[1]]


# --------------------------------------------------------------------------
# MLP module (parameters built deterministically in-script)
# --------------------------------------------------------------------------
def init_mlp_params(key, d_in_num, d_layers, categories, d_embedding):
    params = {}
    d_in = d_in_num
    if categories is not None:
        d_in += len(categories) * d_embedding
        offs = jnp.asarray(
            [0] + list(jnp.cumsum(jnp.asarray(categories[:-1])).tolist()),
            dtype=jnp.int32,
        )
        params["category_offsets"] = offs
        key, sub = jax.random.split(key)
        n_emb = int(sum(categories))
        # kaiming_uniform_(a=sqrt(5)) on an (n_emb, d_embedding) matrix
        fan_in = d_embedding
        bound = math.sqrt(6.0 / ((1.0 + 5.0) * fan_in))
        params["category_embeddings"] = jax.random.uniform(
            sub, (n_emb, d_embedding), jnp.float32, -bound, bound
        )

    layers = []
    prev = d_in
    for d_out in d_layers:
        key, kw, kb = jax.random.split(key, 3)
        # torch.nn.Linear default init: U(-1/sqrt(fan_in), 1/sqrt(fan_in))
        bound = 1.0 / math.sqrt(prev)
        w = jax.random.uniform(kw, (prev, d_out), jnp.float32, -bound, bound)
        b = jax.random.uniform(kb, (d_out,), jnp.float32, -bound, bound)
        layers.append((w, b))
        prev = d_out
    params["layers"] = layers
    return params


def mlp_forward(params, x_num, x_cat, categories):
    parts = []
    if x_num is not None:
        parts.append(x_num)
    if categories is not None:
        # embedding lookup (glue, plain JAX): (B, n_cat) -> (B, n_cat*d_emb)
        idx = x_cat + params["category_offsets"][None, :]
        emb = params["category_embeddings"][idx]            # (B, n_cat, d_emb)
        parts.append(emb.reshape(x_cat.shape[0], -1))
    x = jnp.concatenate(parts, axis=-1)

    weights = [w for (w, _) in params["layers"]]
    biases = [b for (_, b) in params["layers"]]
    return fused_mlp(x, weights, biases)    # single fused Pallas kernel


# --------------------------------------------------------------------------
if __name__ == "__main__":
    batch = 8
    d_in_num = 16
    categories = [3, 5, 7]
    d_embedding = 4
    d_layers = [32, 16]

    key = jax.random.PRNGKey(0)
    kp, kx, kc = jax.random.split(key, 3)

    params = init_mlp_params(kp, d_in_num, d_layers, categories, d_embedding)

    x_num = jax.random.normal(kx, (batch, d_in_num), jnp.float32)
    x_cat = jnp.stack(
        [
            jax.random.randint(jax.random.fold_in(kc, i), (batch,), 0, c)
            for i, c in enumerate(categories)
        ],
        axis=-1,
    ).astype(jnp.int32)  # (batch, n_categories)

    out = mlp_forward(params, x_num, x_cat, categories)
    jax.block_until_ready(out)
    assert out.shape == (batch, d_layers[-1])

    # reference in plain JAX, matching the kernel's bf16-operand / f32-acc math
    x_ref = jnp.concatenate(
        [
            x_num,
            params["category_embeddings"][
                x_cat + params["category_offsets"][None, :]
            ].reshape(batch, -1),
        ],
        axis=-1,
    )
    h = x_ref.astype(jnp.bfloat16)
    y = None
    for (w, b) in params["layers"]:
        y = jnp.dot(h, w.astype(jnp.bfloat16), preferred_element_type=jnp.float32)
        y = jnp.maximum(y + b, 0.0)
        h = y.astype(jnp.bfloat16)

    assert jnp.allclose(out, y, atol=1e-3, rtol=1e-3), (
        f"max abs err = {jnp.max(jnp.abs(out - y))}"
    )

    print("KERNEL_OK")
</pallas_src>

<mosaic_0001>
module attributes {stable_mosaic.version = 11 : i64} {
  func.func @_fused_mlp_kernel(%arg0: i32, %arg1: memref<8x128xbf16, #tpu.memory_space<vmem>>, %arg2: memref<128x128xbf16, #tpu.memory_space<vmem>>, %arg3: memref<1x128xf32, #tpu.memory_space<vmem>>, %arg4: memref<128x128xbf16, #tpu.memory_space<vmem>>, %arg5: memref<1x128xf32, #tpu.memory_space<vmem>>, %arg6: memref<8x128xf32, #tpu.memory_space<vmem>>) attributes {dimension_semantics = [#tpu.dimension_semantics<parallel>], iteration_bounds = array<i64: 1>, scalar_prefetch = 0 : i64, scratch_operands = 0 : i64, tpu.core_type = #tpu.core_type<tc>, window_params = [{transform_indices = @transform_0, window_bounds = array<i64: 8, 128>}, {pipeline_mode = #tpu.pipeline_mode<synchronous>, transform_indices = @transform_1, window_bounds = array<i64: 128, 128>}, {pipeline_mode = #tpu.pipeline_mode<synchronous>, transform_indices = @transform_2, window_bounds = array<i64: 1, 128>}, {pipeline_mode = #tpu.pipeline_mode<synchronous>, transform_indices = @transform_3, window_bounds = array<i64: 128, 128>}, {pipeline_mode = #tpu.pipeline_mode<synchronous>, transform_indices = @transform_4, window_bounds = array<i64: 1, 128>}, {transform_indices = @transform_5, window_bounds = array<i64: 8, 128>}]} {
    %c0 = arith.constant 0 : index
    %c0_0 = arith.constant 0 : index
    %0 = vector.load %arg1[%c0, %c0_0] : memref<8x128xbf16, #tpu.memory_space<vmem>>, vector<8x128xbf16>
    %c0_1 = arith.constant 0 : index
    %c0_2 = arith.constant 0 : index
    %1 = vector.load %arg2[%c0_1, %c0_2] : memref<128x128xbf16, #tpu.memory_space<vmem>>, vector<128x128xbf16>
    %cst = arith.constant dense<0.000000e+00> : vector<8x128xf32>
    %2 = tpu.matmul %0, %1, %cst {dimension_numbers = #tpu.dot_dimension_numbers<[1], [0], [0], [1], [0, 0, 1, 1], [], []>} : vector<8x128xbf16>, vector<128x128xbf16>, vector<8x128xf32> -> vector<8x128xf32>
    %c0_3 = arith.constant 0 : index
    %c0_4 = arith.constant 0 : index
    %3 = vector.load %arg3[%c0_3, %c0_4] : memref<1x128xf32, #tpu.memory_space<vmem>>, vector<1x128xf32>
    %4 = vector.broadcast %3 : vector<1x128xf32> to vector<8x128xf32>
    %5 = arith.addf %2, %4 : vector<8x128xf32>
    %cst_5 = arith.constant 0.000000e+00 : f32
    %6 = vector.broadcast %cst_5 : f32 to vector<8x128xf32>
    %7 = arith.maximumf %5, %6 : vector<8x128xf32>
    %8 = arith.truncf %7 : vector<8x128xf32> to vector<8x128xbf16>
    %c0_6 = arith.constant 0 : index
    %c0_7 = arith.constant 0 : index
    %9 = vector.load %arg4[%c0_6, %c0_7] : memref<128x128xbf16, #tpu.memory_space<vmem>>, vector<128x128xbf16>
    %cst_8 = arith.constant dense<0.000000e+00> : vector<8x128xf32>
    %10 = tpu.matmul %8, %9, %cst_8 {dimension_numbers = #tpu.dot_dimension_numbers<[1], [0], [0], [1], [0, 0, 1, 1], [], []>} : vector<8x128xbf16>, vector<128x128xbf16>, vector<8x128xf32> -> vector<8x128xf32>
    %c0_9 = arith.constant 0 : index
    %c0_10 = arith.constant 0 : index
    %11 = vector.load %arg5[%c0_9, %c0_10] : memref<1x128xf32, #tpu.memory_space<vmem>>, vector<1x128xf32>
    %12 = vector.broadcast %11 : vector<1x128xf32> to vector<8x128xf32>
    %13 = arith.addf %10, %12 : vector<8x128xf32>
    %cst_11 = arith.constant 0.000000e+00 : f32
    %14 = vector.broadcast %cst_11 : f32 to vector<8x128xf32>
    %15 = arith.maximumf %13, %14 : vector<8x128xf32>
    %c0_12 = arith.constant 0 : index
    %c0_13 = arith.constant 0 : index
    %16 = vector.load %arg6[%c0_12, %c0_13] : memref<8x128xf32, #tpu.memory_space<vmem>>, vector<8x128xf32>
    tpu.vector_store %arg6[%c0_12, %c0_13], %15 {strides = array<i32>} : memref<8x128xf32, #tpu.memory_space<vmem>>, vector<8x128xf32>,
    return
  }
  func.func @transform_0(%arg0: i32) -> (i32, i32) {
    %c0_i32 = arith.constant 0 : i32
    %c0_i32_0 = arith.constant 0 : i32
    return %arg0, %c0_i32 : i32, i32
  }
  func.func @transform_1(%arg0: i32) -> (i32, i32) {
    %c0_i32 = arith.constant 0 : i32
    %c0_i32_0 = arith.constant 0 : i32
    %c0_i32_1 = arith.constant 0 : i32
    return %c0_i32, %c0_i32_0 : i32, i32
  }
  func.func @transform_2(%arg0: i32) -> (i32, i32) {
    %c0_i32 = arith.constant 0 : i32
    %c0_i32_0 = arith.constant 0 : i32
    %c0_i32_1 = arith.constant 0 : i32
    return %c0_i32, %c0_i32_0 : i32, i32
  }
  func.func @transform_3(%arg0: i32) -> (i32, i32) {
    %c0_i32 = arith.constant 0 : i32
    %c0_i32_0 = arith.constant 0 : i32
    %c0_i32_1 = arith.constant 0 : i32
    return %c0_i32, %c0_i32_0 : i32, i32
  }
  func.func @transform_4(%arg0: i32) -> (i32, i32) {
    %c0_i32 = arith.constant 0 : i32
    %c0_i32_0 = arith.constant 0 : i32
    %c0_i32_1 = arith.constant 0 : i32
    return %c0_i32, %c0_i32_0 : i32, i32
  }
  func.func @transform_5(%arg0: i32) -> (i32, i32) {
    %c0_i32 = arith.constant 0 : i32
    %c0_i32_0 = arith.constant 0 : i32
    return %arg0, %c0_i32 : i32, i32
  }
}

</mosaic_0001>

<bundles_post_ra>
// kernel: tpu_custom_call.1
= control target key start
LH: loop header
LB: loop body
LE: loop exit
PB: predicated region body
PF: predicated region fallthrough
CT: control target
= control target key end

     0   :  { %10 = vsyncpa [#allocation3], 0  ;;  %s596_s0 = inlined_call_operand.hbm [shape: bf16[8,128], index: 0, kind: input, shape index: {}]   ;;  %s597_s1 = inlined_call_operand.hbm [shape: bf16[128,128], index: 1, kind: input, shape index: {}]   ;;  %s598_s2 = inlined_call_operand.vmem [shape: f32[1,128], index: 2, kind: input, shape index: {}]   ;;  %s599_s3 = inlined_call_operand.hbm [shape: bf16[128,128], index: 3, kind: input, shape index: {}]   ;;  %s600_s4 = inlined_call_operand.vmem [shape: f32[1,128], index: 4, kind: input, shape index: {}]   ;;  %s601_s5 = inlined_call_operand.hbm [shape: f32[8,128], index: 5, kind: output, shape index: {}]  }
   0x1   :  { %11 = vsyncpa [#allocation6], 0 }
   0x2   :  { %12 = vsyncpa [#allocation4], 0  ;;  %s498_s18 = smov [#allocation5]   ;;  %s404_s22 = scalar_lea.hbm %s597_s1, 1024 }
   0x3   :  { %s28_s19 = sshll.u32 %s498_s18, 4  ;;  %p405_p0 = scmp.ne.s32.totalorder %s597_s1, %s404_s22  ;;  %s29_s19 = int_to_ptr.vmem [resolvable:$true] %s28_s19 }
   0x4   :  { %p408_p1 = scmp.lt.u32.totalorder %s404_s22, %s597_s1 }
   0x6   :  { %p410_p2 = pnand %p408_p1, %p405_p0 }
   0x8   :  { %413 = shalt.err (!%p410_p2)
}
   0x9   :  { %s414_s27 = scalar_lea.vmem %s29_s19, 1024  ;;  %p419_p4 = scmp.lt.s32.totalorder %s29_s19, %s29_s19 }
   0xa   :  { %p415_p3 = scmp.ne.s32.totalorder %s29_s19, %s414_s27  ;;  %p420_p5 = scmp.lt.s32.totalorder %s414_s27, %s414_s27 }
   0xc   :  { %p421_p6 = por %p420_p5, %p419_p4 }
   0xe   :  { %p422_p7 = pnand %p421_p6, %p415_p3 }
  0x10   :  { %425 = shalt.err (!%p422_p7)
}
  0x11   :  { %s499_s28 = smov 64   ;;  %s500_s29 = smov 4  }
  0x12   :  { %34 = dma.hbm_to_vmem [thread:$0]  %s597_s1, 1024, %s29_s19, [#allocation6], %s499_s28, %s499_s28, %s500_s29  }
  0x13   :  { %s501_s7 = smov [#allocation2]   ;;  %s502_s9 = smov [#allocation7]  }
  0x14   :  { %s19_s8 = sshll.u32 %s501_s7, 4  ;;  %s42_s10 = sshll.u32 %s502_s9, 4  ;;  %s20_s8 = int_to_ptr.vmem [resolvable:$true] %s19_s8  ;;  %s43_s10 = int_to_ptr.vmem [resolvable:$true] %s42_s10 }
  0x15   :  { %s426_s13 = scalar_lea.hbm %s596_s0, 64 }
  0x16   :  { %p427_p8 = scmp.ne.s32.totalorder %s596_s0, %s426_s13  ;;  %p430_p9 = scmp.lt.u32.totalorder %s426_s13, %s596_s0 }
  0x18   :  { %p432_p10 = pnand %p430_p9, %p427_p8 }
  0x1a   :  { %435 = shalt.err (!%p432_p10)
}
  0x1b   :  { %s436_s1 = scalar_lea.vmem %s20_s8, 64  ;;  %p441_p12 = scmp.lt.s32.totalorder %s20_s8, %s20_s8 }
  0x1c   :  { %p437_p11 = scmp.ne.s32.totalorder %s20_s8, %s436_s1  ;;  %p442_p13 = scmp.lt.s32.totalorder %s436_s1, %s436_s1 }
  0x1e   :  { %p443_p0 = por %p442_p13, %p441_p12 }
  0x20   :  { %p444_p1 = pnand %p443_p0, %p437_p11 }
  0x22   :  { %447 = shalt.err (!%p444_p1)
}
  0x23   :  { %22 = dma.hbm_to_vmem [thread:$0]  %s596_s0, 64, %s20_s8, [#allocation3]  }
  0x24   :  { %s448_s22 = scalar_lea.hbm %s599_s3, 1024 }
  0x25   :  { %p449_p2 = scmp.ne.s32.totalorder %s599_s3, %s448_s22  ;;  %p452_p3 = scmp.lt.u32.totalorder %s448_s22, %s599_s3 }
  0x27   :  { %p454_p4 = pnand %p452_p3, %p449_p2 }
  0x29   :  { %457 = shalt.err (!%p454_p4)
}
  0x2a   :  { %s458_s27 = scalar_lea.vmem %s43_s10, 1024  ;;  %p463_p6 = scmp.lt.s32.totalorder %s43_s10, %s43_s10 }
  0x2b   :  { %p459_p5 = scmp.ne.s32.totalorder %s43_s10, %s458_s27  ;;  %p464_p7 = scmp.lt.s32.totalorder %s458_s27, %s458_s27 }
  0x2d   :  { %p465_p8 = por %p464_p7, %p463_p6 }
  0x2f   :  { %p466_p9 = pnand %p465_p8, %p459_p5 }
  0x31   :  { %469 = shalt.err (!%p466_p9)
}
  0x32   :  { %48 = dma.hbm_to_vmem [thread:$0]  %s599_s3, 1024, %s43_s10, [#allocation6], %s499_s28, %s499_s28, %s500_s29  }
  0x33   :  { %492 = dma.done.wait [#allocation3], 64  }
  0x34   :  { %493 = vsyncadd [#allocation3], 4294967232 }
  0x35   :  { %494 = dma.done.wait [#allocation6], 2048  }
  0x36   :  { %495 = vsyncadd [#allocation6], 4294965248  ;;  %v503_v0 = vmov 0.0   ;;  %vm504_vm0 = vmmov 0   ;;  %v388_v1 = vld [vmem:[#allocation5] sm:$0xff]   ;;  %v389_v2 = vld [vmem:[#allocation5 + $0x8] sm:$0xff]  }
  0x37   :  { %340 = vmatprep.subr.bf16.mxu0 %v503_v0  ;;  %356 = vmatprep.mubr.msk.bf16.mxu0 %vm504_vm0, %v503_v0  ;;  %v390_v3 = vld [vmem:[#allocation5 + $0x10] sm:$0xff]   ;;  %v396_v4 = vld [vmem:[#allocation7] sm:$0xff]   ;;  %v391_v5 = vld [vmem:[#allocation5 + $0x18] sm:$0xff]   ;;  %s505_s7 = smov [#allocation8]  }
  0x38   :  { %360 = vmatprep.subr.bf16.mxu1 %v503_v0  ;;  %376 = vmatprep.mubr.msk.bf16.mxu1 %vm504_vm0, %v503_v0  ;;  %v397_v6 = vld [vmem:[#allocation7 + $0x8] sm:$0xff]   ;;  %v392_v7 = vld [vmem:[#allocation5 + $0x20] sm:$0xff]   ;;  %v398_v8 = vld [vmem:[#allocation7 + $0x10] sm:$0xff]   ;;  %s294_s8 = sshll.u32 %s505_s7, 4  ;;  %s295_s8 = int_to_ptr.vmem [resolvable:$true] %s294_s8 }
  0x39   :  { %341 = vmatpush3.bf16.msra.mxu0 %v388_v1  ;;  %361 = vmatpush3.bf16.msra.mxu1 %v396_v4  ;;  %v393_v9 = vld [vmem:[#allocation5 + $0x28] sm:$0xff]   ;;  %v399_v10 = vld [vmem:[#allocation7 + $0x18] sm:$0xff]   ;;  %v394_v11 = vld [vmem:[#allocation5 + $0x30] sm:$0xff]   ;;  %p475_p11 = scmp.lt.s32.totalorder %s295_s8, %s295_s8 }
  0x3a   :  { %342 = vmatprep.subr.bf16.mxu0 %v503_v0  ;;  %362 = vmatprep.subr.bf16.mxu1 %v503_v0  ;;  %v400_v12 = vld [vmem:[#allocation7 + $0x20] sm:$0xff]   ;;  %v395_v13 = vld [vmem:[#allocation5 + $0x38] sm:$0xff]   ;;  %v401_v14 = vld [vmem:[#allocation7 + $0x28] sm:$0xff]  }
  0x3b   :  { %v61_v15 = vld [vmem:[#allocation2] sm:$0xf]  ;;  %v402_v16 = vld [vmem:[#allocation7 + $0x30] sm:$0xff]  }
  0x3c   :  { %v403_v17 = vld [vmem:[#allocation7 + $0x38] sm:$0xff]  }
  0x3d   :  { %343 = vmatpush3.bf16.msra.mxu0 %v389_v2  ;;  %363 = vmatpush3.bf16.msra.mxu1 %v397_v6  ;;  %v304_v18 = vld [vmem:[%s598_s2] ss:$0 sm:$0xff]  ;;  %s470_s2 = scalar_lea.vmem %s295_s8, 128 }
  0x3e   :  { %344 = vmatprep.subr.bf16.mxu0 %v503_v0  ;;  %364 = vmatprep.subr.bf16.mxu1 %v503_v0  ;;  %v313_v26 = vld [vmem:[%s600_s4] ss:$0 sm:$0xff]  ;;  %p471_p10 = scmp.ne.s32.totalorder %s295_s8, %s470_s2  ;;  %p476_p12 = scmp.lt.s32.totalorder %s470_s2, %s470_s2 }
  0x40   :  { %p477_p13 = por %p476_p12, %p475_p11 }
  0x41   :  { %345 = vmatpush3.bf16.msra.mxu0 %v390_v3  ;;  %365 = vmatpush3.bf16.msra.mxu1 %v398_v8 }
  0x42   :  { %346 = vmatprep.subr.bf16.mxu0 %v503_v0  ;;  %366 = vmatprep.subr.bf16.mxu1 %v503_v0  ;;  %p478_p0 = pnand %p477_p13, %p471_p10 }
  0x45   :  { %347 = vmatpush3.bf16.msra.mxu0 %v391_v5  ;;  %367 = vmatpush3.bf16.msra.mxu1 %v399_v10 }
  0x46   :  { %348 = vmatprep.subr.bf16.mxu0 %v503_v0  ;;  %368 = vmatprep.subr.bf16.mxu1 %v503_v0 }
  0x49   :  { %349 = vmatpush3.bf16.msra.mxu0 %v392_v7  ;;  %369 = vmatpush3.bf16.msra.mxu1 %v400_v12 }
  0x4a   :  { %350 = vmatprep.subr.bf16.mxu0 %v503_v0  ;;  %370 = vmatprep.subr.bf16.mxu1 %v503_v0 }
  0x4d   :  { %351 = vmatpush3.bf16.msra.mxu0 %v393_v9  ;;  %371 = vmatpush3.bf16.msra.mxu1 %v401_v14 }
  0x4e   :  { %352 = vmatprep.subr.bf16.mxu0 %v503_v0  ;;  %372 = vmatprep.subr.bf16.mxu1 %v503_v0 }
  0x51   :  { %353 = vmatpush3.bf16.msra.mxu0 %v394_v11  ;;  %373 = vmatpush3.bf16.msra.mxu1 %v402_v16 }
  0x52   :  { %354 = vmatprep.subr.bf16.mxu0 %v503_v0  ;;  %374 = vmatprep.subr.bf16.mxu1 %v503_v0 }
  0x55   :  { %355 = vmatpush3.bf16.msra.mxu0 %v395_v13  ;;  %375 = vmatpush3.bf16.msra.mxu1 %v403_v17 }
  0x58   :  { %357 = vmatmul.mubr.bf16.vlgmr.msra.gmra.mrb[0].mxu0 %v61_v15 }
 0x12b   :  { %v167_v19 = vpop.f32.mrb[0].mxu0 }
 0x12c   :  { %v168_v20 = vadd.f32 %v304_v18, %v167_v19  ;;  %v358_v21 = vpop.f32.mrb[1].mxu0 }
 0x12d   :  { %v170_v22 = vpop.f32.mrb[2].mxu0 }
 0x12e   :  { %v173_v23 = vmax.f32 %v168_v20, 0.0  ;;  %v359_v24 = vpop.f32.mrb[3].mxu0 }
 0x130   :  { %v174_v25 = vpack.c.bf16 %v173_v23, %v173_v23 }
 0x132   :  { %377 = vmatmul.mubr.bf16.vlgmr.msra.gmra.mrb[0].mxu1 %v174_v25 }
 0x205   :  { %v280_v27 = vpop.f32.mrb[0].mxu1 }
 0x206   :  { %v281_v28 = vadd.f32 %v313_v26, %v280_v27  ;;  %v378_v29 = vpop.f32.mrb[1].mxu1 }
 0x207   :  { %v283_v30 = vpop.f32.mrb[2].mxu1 }
 0x208   :  { %v286_v31 = vmax.f32 %v281_v28, 0.0  ;;  %v379_v32 = vpop.f32.mrb[3].mxu1 }
 0x20a   :  { %287 = vst [vmem:[#allocation8] sm:$0xff] %v286_v31 }
 0x20b   :  { %481 = shalt.err (!%p478_p0)
}
 0x20c   :  { %s482_s4 = scalar_lea.hbm %s601_s5, 128 }
 0x20d   :  { %p483_p1 = scmp.ne.s32.totalorder %s601_s5, %s482_s4  ;;  %p486_p2 = scmp.lt.u32.totalorder %s482_s4, %s601_s5 }
 0x20f   :  { %p488_p3 = pnand %p486_p2, %p483_p1 }
 0x211   :  { %491 = shalt.err (!%p488_p3)
}
 0x212   :  { %297 = dma.vmem_to_hbm [thread:$0]  %s295_s8, 128, %s601_s5, [#allocation4]  }
 0x213   :  { %496 = dma.done.wait [#allocation4], 128  }
 0x214   :  { %497 = vsyncadd [#allocation4], 4294967168 }
 0x215   :  { %301 = vsyncpa [#allocation3], 1 }
 0x216   :  { %302 = vsyncpa [#allocation6], 1 }
 0x217   :  { %303 = vsyncpa [#allocation4], 1 }

</bundles_post_ra>
